<compile_context>
chip_gen: v5e
topology: v5e:2x2
jax: 0.10.0
libtpu: 0.0.40
codegen_flags: <defaults>
</compile_context>

<pallas_src>
import functools

import jax
import jax.numpy as jnp
from jax.experimental import pallas as pl
from jax.experimental.pallas import tpu as pltpu


def _sepconv1d_kernel(x_ref, pos_ref, wdw_ref, wpw_ref, bf_ref, o_ref,
                      *, k_taps, pad, stride, seq_len, segw):
    """One column-block of the fused separable conv.

    x_ref:   (S, C_in, CB)  phase-decomposed, channels-major input columns
    pos_ref: (1, CB)        int32: position of each column inside its segment
    wdw_ref: (C_in, K)      depthwise taps
    wpw_ref: (C_out, C_in)  pointwise weight
    bf_ref:  (C_out, 1)     fused bias (wpw @ bdw + bpw), float32
    o_ref:   (C_out, CB)    output columns (one column per output position)
    """
    _, _, cb = x_ref.shape
    x_all = x_ref[...]                       # (S, C_in, CB)
    wdw = wdw_ref[...]                       # (C_in, K)
    pos = pos_ref[...]                       # (1, CB) int32

    dw = None                                # depthwise accumulator (C_in, CB)
    for k in range(k_taps):                  # K is small & static -> unrolled
        off = k - pad                        # tap offset in the original sequence
        p = off % stride                     # which input phase holds it
        q = off // stride                    # lane shift inside that phase
        valid_len = (seq_len - p + stride - 1) // stride   # valid entries in phase p

        slab = x_all[p]                      # (C_in, CB): free outer-dim select
        shift = (-q) % cb
        if shift:
            # rolled[m] = slab[m + q]  (wrapped values are masked below)
            slab = pltpu.roll(slab, shift, axis=1)

        # Zero-padding semantics: position m of a segment is valid for this tap
        # iff 0 <= m + q < valid_len.  Statically skip masks that are always true.
        no_lo = q >= 0
        no_hi = (valid_len - q) >= segw
        if no_lo and no_hi:
            masked = slab
        else:
            if no_lo:
                valid = pos < (valid_len - q)
            elif no_hi:
                valid = pos >= -q
            else:
                valid = jnp.logical_and(pos >= -q, pos < (valid_len - q))
            masked = jnp.where(valid, slab, 0)

        tap = masked * wdw[:, k:k + 1]       # per-channel tap weight (VPU FMA)
        dw = tap if dw is None else dw + tap

    # Pointwise 1x1 conv: one wide channel-mixing matmul on the MXU,
    # columns = TB * SEGW (lane-dense), then one block store.
    y = jnp.dot(wpw_ref[...], dw, preferred_element_type=jnp.float32)
    y = y + bf_ref[...]                      # fused depthwise+pointwise bias
    o_ref[...] = y.astype(o_ref.dtype)


def sep_conv1d(x, w_dw, b_dw, w_pw, b_pw, *, stride, pad):
    """Pallas equivalent of _SepConv1d.forward: pointwise(depthwise(x)).

    x:     (N, C_in, L)
    w_dw:  (C_in, 1, K)   torch depthwise Conv1d weight (groups=C_in)
    b_dw:  (C_in,)
    w_pw:  (C_out, C_in, 1)
    b_pw:  (C_out,)
    """
    n, c_in, seq_len = x.shape
    c_out = w_pw.shape[0]
    k_taps = w_dw.shape[-1]
    s = int(stride)

    l_out = (seq_len + 2 * pad - k_taps) // s + 1
    assert l_out >= 1, "empty output"
    l_seg = -(-seq_len // s)                 # ceil(L / S): per-phase length
    segw = max(l_seg, l_out)                 # kernel segment width per batch element

    # ---- phase-decomposed, channels-major input: (S, C_in, N*SEGW) ------------
    xp = x
    if s * segw != seq_len:
        xp = jnp.pad(x, ((0, 0), (0, 0), (0, s * segw - seq_len)))
    xph = xp.reshape(n, c_in, segw, s)
    xph = jnp.transpose(xph, (3, 1, 0, 2)).reshape(s, c_in, n * segw)

    # ---- fused weights / bias --------------------------------------------------
    wdw2 = w_dw.reshape(c_in, k_taps).astype(x.dtype)
    wpw2 = w_pw.reshape(c_out, c_in).astype(x.dtype)
    b_f = (wpw2.astype(jnp.float32) @ b_dw.astype(jnp.float32).reshape(c_in, 1)
           + b_pw.astype(jnp.float32).reshape(c_out, 1))          # (C_out, 1)

    # Per-column position inside its batch segment (avoids in-kernel int mod).
    pos = jnp.tile(jnp.arange(segw, dtype=jnp.int32), n).reshape(1, n * segw)

    # ---- VMEM-budgeted batch blocking (prefer >=2 parallel steps for v7x) -----
    itemsize = jnp.dtype(x.dtype).itemsize
    try:
        vmem_cap = int(pltpu.get_tpu_info().vmem_capacity_bytes)
    except Exception:
        vmem_cap = 64 * 1024 * 1024          # v7x floor
    per_seg = segw * (2 * (s * c_in + c_out) * itemsize          # dbl-buffered i/o
                      + (c_in + c_out + 2) * 4)                  # f32 temps + pos
    tb_fit = max(1, (vmem_cap // 2) // max(per_seg, 1))

    legal = [t for t in range(1, n + 1)
             if n % t == 0 and ((t * segw) % 128 == 0 or t == n)]
    fitting = [t for t in legal if t <= tb_fit] or [min(legal)]
    tb = max(fitting)
    if n // tb < 2:
        multi = [t for t in fitting if n // t >= 2]
        if multi:
            tb = max(multi)                  # give both v7x TensorCores a step
    cb = tb * segw
    grid = (n // tb,)

    kern = functools.partial(_sepconv1d_kernel, k_taps=k_taps, pad=pad,
                             stride=s, seq_len=seq_len, segw=segw)

    out = pl.pallas_call(
        kern,
        out_shape=jax.ShapeDtypeStruct((c_out, n * segw), x.dtype),
        grid=grid,
        in_specs=[
            pl.BlockSpec((s, c_in, cb), lambda i: (0, 0, i)),
            pl.BlockSpec((1, cb), lambda i: (0, i)),
            pl.BlockSpec((c_in, k_taps), lambda i: (0, 0)),
            pl.BlockSpec((c_out, c_in), lambda i: (0, 0)),
            pl.BlockSpec((c_out, 1), lambda i: (0, 0)),
        ],
        out_specs=pl.BlockSpec((c_out, cb), lambda i: (0, i)),
        compiler_params=pltpu.CompilerParams(
            dimension_semantics=("parallel",),
            vmem_limit_bytes=max(32 * 1024 * 1024, (vmem_cap * 3) // 4)),
    )(xph, pos, wdw2, wpw2, b_f)

    # (C_out, N*SEGW) -> (N, C_out, L_out)
    out = out.reshape(c_out, n, segw)[:, :, :l_out]
    return jnp.transpose(out, (1, 0, 2))


def _sep_conv1d_ref(x, w_dw, b_dw, w_pw, b_pw, stride, pad):
    """Pure-JAX reference matching torch Conv1d semantics."""
    dw = jax.lax.conv_general_dilated(
        x, w_dw, window_strides=(stride,), padding=[(pad, pad)],
        dimension_numbers=("NCH", "OIH", "NCH"),
        feature_group_count=x.shape[1])
    dw = dw + b_dw.reshape(1, -1, 1)
    pw = jax.lax.conv_general_dilated(
        dw, w_pw, window_strides=(1,), padding=[(0, 0)],
        dimension_numbers=("NCH", "OIH", "NCH"))
    return pw + b_pw.reshape(1, -1, 1)


if __name__ == "__main__":
    key = jax.random.PRNGKey(0)
    k1, k2, k3, k4, k5 = jax.random.split(key, 5)

    # Small, lane-friendly shapes: batch=2, ni=4, no=8, L=128, kernel=3, pad=1.
    n, ni, no, seq_len = 2, 4, 8, 128
    k_taps, pad = 3, 1

    x = jax.random.normal(k1, (n, ni, seq_len), dtype=jnp.float32)
    w_dw = jax.random.normal(k2, (ni, 1, k_taps), dtype=jnp.float32) * 0.5
    b_dw = jax.random.normal(k3, (ni,), dtype=jnp.float32) * 0.1
    w_pw = jax.random.normal(k4, (no, ni, 1), dtype=jnp.float32) * 0.5
    b_pw = jax.random.normal(k5, (no,), dtype=jnp.float32) * 0.1

    for stride in (1, 2):
        y = jax.block_until_ready(
            sep_conv1d(x, w_dw, b_dw, w_pw, b_pw, stride=stride, pad=pad))
        y_ref = _sep_conv1d_ref(x, w_dw, b_dw, w_pw, b_pw, stride, pad)
        assert y.shape == y_ref.shape, (stride, y.shape, y_ref.shape)
        assert jnp.allclose(y, y_ref, atol=1e-4, rtol=1e-4), stride

    print("KERNEL_OK")
</pallas_src>

<mosaic_0001>
module attributes {stable_mosaic.version = 11 : i64} {
  func.func @_sepconv1d_kernel(%arg0: i32, %arg1: memref<1x4x128xf32, #tpu.memory_space<vmem>>, %arg2: memref<1x128xi32, #tpu.memory_space<vmem>>, %arg3: memref<4x3xf32, #tpu.memory_space<vmem>>, %arg4: memref<8x4xf32, #tpu.memory_space<vmem>>, %arg5: memref<8x1xf32, #tpu.memory_space<vmem>>, %arg6: memref<8x128xf32, #tpu.memory_space<vmem>>) attributes {dimension_semantics = [#tpu.dimension_semantics<parallel>], iteration_bounds = array<i64: 2>, scalar_prefetch = 0 : i64, scratch_operands = 0 : i64, tpu.core_type = #tpu.core_type<tc>, window_params = [{transform_indices = @transform_0, window_bounds = array<i64: 1, 4, 128>}, {transform_indices = @transform_1, window_bounds = array<i64: 1, 128>}, {pipeline_mode = #tpu.pipeline_mode<synchronous>, transform_indices = @transform_2, window_bounds = array<i64: 4, 3>}, {pipeline_mode = #tpu.pipeline_mode<synchronous>, transform_indices = @transform_3, window_bounds = array<i64: 8, 4>}, {pipeline_mode = #tpu.pipeline_mode<synchronous>, transform_indices = @transform_4, window_bounds = array<i64: 8, 1>}, {transform_indices = @transform_5, window_bounds = array<i64: 8, 128>}]} {
    %c0 = arith.constant 0 : index
    %c0_0 = arith.constant 0 : index
    %c0_1 = arith.constant 0 : index
    %0 = vector.load %arg1[%c0, %c0_0, %c0_1] : memref<1x4x128xf32, #tpu.memory_space<vmem>>, vector<1x4x128xf32>
    %c0_2 = arith.constant 0 : index
    %c0_3 = arith.constant 0 : index
    %1 = vector.load %arg3[%c0_2, %c0_3] : memref<4x3xf32, #tpu.memory_space<vmem>>, vector<4x3xf32>
    %c0_4 = arith.constant 0 : index
    %c0_5 = arith.constant 0 : index
    %2 = vector.load %arg2[%c0_4, %c0_5] : memref<1x128xi32, #tpu.memory_space<vmem>>, vector<1x128xi32>
    %3 = vector.shape_cast %0 : vector<1x4x128xf32> to vector<4x128xf32>
    %c1_i32 = arith.constant 1 : i32
    %4 = tpu.dynamic_rotate %3 by %c1_i32 dim 1 : vector<4x128xf32>, i32 -> vector<4x128xf32>
    %c1_i32_6 = arith.constant 1 : i32
    %5 = vector.broadcast %c1_i32_6 : i32 to vector<1x128xi32>
    %6 = arith.cmpi sge, %2, %5 : vector<1x128xi32>
    %c0_i32 = arith.constant 0 : i32
    %7 = arith.sitofp %c0_i32 : i32 to f32
    %8 = vector.shape_cast %6 : vector<1x128xi1> to vector<1x128xi1>
    %9 = vector.broadcast %8 : vector<1x128xi1> to vector<4x128xi1>
    %10 = vector.broadcast %7 : f32 to vector<4x128xf32>
    %11 = arith.select %9, %4, %10 : vector<4x128xi1>, vector<4x128xf32>
    %12 = vector.extract_strided_slice %1 {offsets = [0, 0], sizes = [4, 1], strides = [1, 1]} : vector<4x3xf32> to vector<4x1xf32>
    %13 = vector.broadcast %12 : vector<4x1xf32> to vector<4x128xf32>
    %14 = arith.mulf %11, %13 : vector<4x128xf32>
    %15 = vector.shape_cast %0 : vector<1x4x128xf32> to vector<4x128xf32>
    %16 = vector.extract_strided_slice %1 {offsets = [0, 1], sizes = [4, 1], strides = [1, 1]} : vector<4x3xf32> to vector<4x1xf32>
    %17 = vector.broadcast %16 : vector<4x1xf32> to vector<4x128xf32>
    %18 = arith.mulf %15, %17 : vector<4x128xf32>
    %19 = arith.addf %14, %18 : vector<4x128xf32>
    %20 = vector.shape_cast %0 : vector<1x4x128xf32> to vector<4x128xf32>
    %c127_i32 = arith.constant 127 : i32
    %21 = tpu.dynamic_rotate %20 by %c127_i32 dim 1 : vector<4x128xf32>, i32 -> vector<4x128xf32>
    %c127_i32_7 = arith.constant 127 : i32
    %22 = vector.broadcast %c127_i32_7 : i32 to vector<1x128xi32>
    %23 = arith.cmpi slt, %2, %22 : vector<1x128xi32>
    %c0_i32_8 = arith.constant 0 : i32
    %24 = arith.sitofp %c0_i32_8 : i32 to f32
    %25 = vector.shape_cast %23 : vector<1x128xi1> to vector<1x128xi1>
    %26 = vector.broadcast %25 : vector<1x128xi1> to vector<4x128xi1>
    %27 = vector.broadcast %24 : f32 to vector<4x128xf32>
    %28 = arith.select %26, %21, %27 : vector<4x128xi1>, vector<4x128xf32>
    %29 = vector.extract_strided_slice %1 {offsets = [0, 2], sizes = [4, 1], strides = [1, 1]} : vector<4x3xf32> to vector<4x1xf32>
    %30 = vector.broadcast %29 : vector<4x1xf32> to vector<4x128xf32>
    %31 = arith.mulf %28, %30 : vector<4x128xf32>
    %32 = arith.addf %19, %31 : vector<4x128xf32>
    %c0_9 = arith.constant 0 : index
    %c0_10 = arith.constant 0 : index
    %33 = vector.load %arg4[%c0_9, %c0_10] : memref<8x4xf32, #tpu.memory_space<vmem>>, vector<8x4xf32>
    %cst = arith.constant dense<0.000000e+00> : vector<8x128xf32>
    %34 = tpu.matmul %33, %32, %cst {dimension_numbers = #tpu.dot_dimension_numbers<[1], [0], [0], [1], [0, 0, 1, 1], [], []>} : vector<8x4xf32>, vector<4x128xf32>, vector<8x128xf32> -> vector<8x128xf32>
    %c0_11 = arith.constant 0 : index
    %c0_12 = arith.constant 0 : index
    %35 = vector.load %arg5[%c0_11, %c0_12] : memref<8x1xf32, #tpu.memory_space<vmem>>, vector<8x1xf32>
    %36 = vector.broadcast %35 : vector<8x1xf32> to vector<8x128xf32>
    %37 = arith.addf %34, %36 : vector<8x128xf32>
    %c0_13 = arith.constant 0 : index
    %c0_14 = arith.constant 0 : index
    %38 = vector.load %arg6[%c0_13, %c0_14] : memref<8x128xf32, #tpu.memory_space<vmem>>, vector<8x128xf32>
    tpu.vector_store %arg6[%c0_13, %c0_14], %37 {strides = array<i32>} : memref<8x128xf32, #tpu.memory_space<vmem>>, vector<8x128xf32>,
    return
  }
  func.func @transform_0(%arg0: i32) -> (i32, i32, i32) {
    %c0_i32 = arith.constant 0 : i32
    %c0_i32_0 = arith.constant 0 : i32
    %c0_i32_1 = arith.constant 0 : i32
    return %c0_i32, %c0_i32_0, %arg0 : i32, i32, i32
  }
  func.func @transform_1(%arg0: i32) -> (i32, i32) {
    %c0_i32 = arith.constant 0 : i32
    %c0_i32_0 = arith.constant 0 : i32
    return %c0_i32, %arg0 : i32, i32
  }
  func.func @transform_2(%arg0: i32) -> (i32, i32) {
    %c0_i32 = arith.constant 0 : i32
    %c0_i32_0 = arith.constant 0 : i32
    %c0_i32_1 = arith.constant 0 : i32
    return %c0_i32, %c0_i32_0 : i32, i32
  }
  func.func @transform_3(%arg0: i32) -> (i32, i32) {
    %c0_i32 = arith.constant 0 : i32
    %c0_i32_0 = arith.constant 0 : i32
    %c0_i32_1 = arith.constant 0 : i32
    return %c0_i32, %c0_i32_0 : i32, i32
  }
  func.func @transform_4(%arg0: i32) -> (i32, i32) {
    %c0_i32 = arith.constant 0 : i32
    %c0_i32_0 = arith.constant 0 : i32
    %c0_i32_1 = arith.constant 0 : i32
    return %c0_i32, %c0_i32_0 : i32, i32
  }
  func.func @transform_5(%arg0: i32) -> (i32, i32) {
    %c0_i32 = arith.constant 0 : i32
    %c0_i32_0 = arith.constant 0 : i32
    return %c0_i32, %arg0 : i32, i32
  }
}

</mosaic_0001>

<bundles_post_ra>
// kernel: tpu_custom_call.1
= control target key start
LH: loop header
LB: loop body
LE: loop exit
PB: predicated region body
PF: predicated region fallthrough
CT: control target
= control target key end

     0   :  { %10 = vsyncpa [#allocation3], 0  ;;  %s645_s0 = inlined_call_operand.vmem [shape: f32[1,4,256], index: 0, kind: input, shape index: {}]   ;;  %s646_s1 = inlined_call_operand.vmem [shape: s32[1,256], index: 1, kind: input, shape index: {}]   ;;  %s647_s2 = inlined_call_operand.vmem [shape: f32[4,3], index: 2, kind: input, shape index: {}]   ;;  %s648_s3 = inlined_call_operand.vmem [shape: f32[8,4], index: 3, kind: input, shape index: {}]   ;;  %s649_s4 = inlined_call_operand.vmem [shape: f32[8,1], index: 4, kind: input, shape index: {}]   ;;  %s650_s5 = inlined_call_operand.hbm [shape: f32[8,256], index: 5, kind: output, shape index: {}]  }
   0x1   :  { %12 = vsyncpa [#allocation3 + $0x1], 0  ;;  %s548_s18 = smov 0   ;;  %s550_s19 = smov 0  }
   0x2   :  { %s552_s20 = smov 0   ;;  %s554_s21 = smov 0  }
   0x3 LB: > { %s569_s22 = sadd.s32 4294967295, %s511_s21   ;;  %s389_s23 = sadd.s32 4294967294, %s511_s21   ;;  %s511_s21 = sphi %s554_s21, %s656_s21   ;;  %s507_s20 = sphi %s552_s20, %s655_s20   ;;  %s503_s19 = sphi %s550_s19, %s654_s19   ;;  %s499_s18 = sphi %s548_s18, %s653_s18  }
   0x4   : > { %s573_s24 = sadd.s32 1, %s511_s21   ;;  %s140_s25 = sadd.s32 1, %s507_s20 }
   0x5   : > { %s137_s26 = ssub.s32 %s511_s21, %s573_s24  ;;  %p150_p0 = scmp.ne.s32.totalorder %s507_s20, %s503_s19 }
   0x6   : > { %p138_p1 = scmp.eq.s32.totalorder %s137_s26, 0  ;;  %p151_p2 = scmp.eq.s32.totalorder %s569_s22, 1 }
   0x7   : > { %p156_p3 = scmp.ne.s32.totalorder %s503_s19, %s499_s18  ;;  %p157_p4 = scmp.eq.s32.totalorder %s389_s23, 1 }
   0x8   : > { %s584_s27 = scalar_select %p138_p1, %s507_s20, %s140_s25  }
   0x9   : > { %p586_p5 = por %p151_p2, %p150_p0  ;;  %p590_p6 = por %p157_p4, %p156_p3 }
   0xa   : > { %p392_p7 = scmp.ge.s32.totalorder %s511_s21, 1  ;;  %p197_p8 = scmp.lt.s32.totalorder %s511_s21, 3 }
   0xc   : > { %p198_p9 = pnand %p392_p7, %p197_p8 }
   0xd   : > { %p227_p10 = scmp.lt.s32.totalorder (!%p198_p9), %s569_s22, 1  ;;  %s516_s12 = smov (!%p198_p9), 1  }
   0xe   : > { %201 = sbr.rel (%p198_p9) target bundleno = 285 (0x11d), region = 40  ;;  %s517_s13 = smov (!%p198_p9), 127  }
   0xf   : > { %s224_s30 = sand.u32 (!%p198_p9), 1, %s503_s19  }
  0x10   : > { %s393_s6 = sshll.u32 (!%p198_p9), %s224_s30, 3  ;;  %s306_s14 = scalar_lea.sflag (!%p198_p9), [#allocation3], %s224_s30 }
  0x13   : > { %v235_v0 = vld [vmem:[%s647_s2] sm:$0xf]  ;;  %v513_v1 = vmov 1   ;;  %v514_v2 = vmov 0   ;;  %s228_s7 = scalar_select %p227_p10, %s569_s22, 1  ;;  %v515_v3 = vmov 2  }
  0x14   : > { %446 = vset.pattern.permute.xlu1 %v513_v1  ;;  %445 = vset.pattern.permute.xlu0 %v514_v2  ;;  %v270_v5 = vld [vmem:[%s649_s4] sm:$0xff]  ;;  %vm280_vm4 = vcmask 1043456   ;;  %vm276_vm5 = vcmask 31744  }
  0x15   : > { %251 = vperm.xlu1 %446, %v235_v0   ;;  %447 = vset.pattern.permute.xlu2 %v515_v3  ;;  %s394_s8 = sshll.u32 %s228_s7, 2  ;;  %s233_s23 = scalar_lea.vmem %s646_s1, %s228_s7  ;;  %v269_v23 = vld [vmem:[%s648_s3] sm:$0xff] }
  0x16   : > { %264 = vperm.xlu2 %447, %v235_v0   ;;  %s230_s11 = scalar_lea.vmem %s645_s0, %s394_s8  ;;  %v236_v6 = vld [vmem:[%s233_s23] sm:$0x1]  ;;  %s398_s7 = sshll.u32 %s569_s22, 3 }
  0x17   : > { %v234_v4 = vld [vmem:[%s230_s11] sm:$0xf]  ;;  %vm258_vm0 = vcmp.lt.s32.totalorder %v236_v6, 127  ;;  %vm239_vm1 = vcmp.ge.s32.totalorder %v236_v6, 1  ;;  %s316_s10 = scalar_lea.hbm %s650_s5, %s398_s7  ;;  %s226_s11 = scalar_lea.vmem [#allocation2], %s393_s6 }
  0x18   : > { %237 = vrot.lane.b32.xlu0 %v234_v4, %s516_s12  ;;  %v259_v8 = vsel %vm258_vm0, 1, %v514_v2  ;;  %v240_v9 = vsel %vm239_vm1, 1, %v514_v2  ;;  %s318_s12 = sshll.u32 %s226_s11, 4  ;;  %s469_s23 = scalar_lea.hbm %s650_s5, 16  ;;  %s319_s12 = int_to_ptr.vmem [resolvable:$true] %s318_s12 }
  0x19   : > { %v260_v10 = vperm.slane %v259_v8, 0  ;;  %v241_v12 = vperm.slane %v240_v9, 0 }
  0x1b   : > { %vm261_vm2 = vcmp.eq.s32.totalorder %v260_v10, 1  ;;  %vm242_vm3 = vcmp.eq.s32.totalorder %v241_v12, 1 }
  0x1d   : > { %256 = vrot.lane.b32.xlu1 %v234_v4, %s517_s13  ;;  %s320_s13 = sshll.u32 %s316_s10, 4  ;;  %s321_s13 = int_to_ptr.hbm [resolvable:$true] %s320_s13 }
  0x1e   : > { %448 = vset.pattern.permute.xlu2 %v514_v2  ;;  %s463_s15 = sshra.s32 %s321_s13, 4  ;;  %s464_s15 = int_to_ptr.hbm [resolvable:$true] %s463_s15 }
  0x1f   : > { %273 = vperm.xlu2 %448, %v270_v5   ;;  %s465_s16 = scalar_lea.hbm %s464_s15, 8  ;;  %p470_p0 = scmp.lt.s32.totalorder %s464_s15, %s650_s5 }
  0x20   : > { %246 = vperm.xlu0 %445, %v235_v0   ;;  %p466_p11 = scmp.ne.s32.totalorder %s464_s15, %s465_s16  ;;  %p471_p1 = scmp.lt.s32.totalorder %s469_s23, %s465_s16 }
  0x22   : > { %p467_p12 = pnand %p466_p11, %p586_p5  ;;  %p472_p2 = por %p471_p1, %p470_p0 }
  0x24   : > { %p468_p13 = pneg %p467_p12 }
  0x26   : > { %p473_p3 = pnand %p472_p2, %p468_p13 }
  0x70   : > { %v265_v15 = vpop.permute.xlu2 %264 }
  0x79   : > { %v274_v24 = vpop.permute.xlu2 %273 }
  0x87   : > { %v252_v7 = vpop.permute.xlu1 %251 }
  0x88   : > { %v254_v18 = vmul.f32 %v252_v7, %v234_v4 }
  0x8a   : > { %v238_v11 = vpop.permute.xlu0 %237 }
  0x8b   : > { %v243_v16 = vsel %vm242_vm3, %v238_v11, 0.0 }
  0x8f   : > { %v257_v13 = vpop.permute.xlu1 %256 }
  0x90   : > { %v262_v14 = vsel %vm261_vm2, %v257_v13, 0.0 }
  0x91   : > { %v267_v20 = vmul.f32 %v265_v15, %v262_v14 }
  0x92   : > { %v247_v17 = vpop.permute.xlu0 %246 }
  0x93   : > { %v249_v19 = vmul.f32 %v247_v17, %v243_v16 }
  0x95   : > { %v255_v21 = vadd.f32 %v254_v18, %v249_v19 }
  0x97   : > { %v268_v22 = vadd.f32 %v267_v20, %v255_v21 }
  0x99   : > { %395 = vmatpush.msk.msra.mxu0 %vm280_vm4, %v268_v22 }
  0x9a   : > { %396 = vmatmul.msk.f32.vlgmr.msra.gmra.mxu0 %vm276_vm5, %v269_v23 }
 0x117   : > { %v301_v25 = vpop.f32.mrf.mxu0 }
 0x118   : > { %v302_v26 = vadd.f32 %v301_v25, %v274_v24 }
 0x11a   : > { %304 = vst [vmem:[%s226_s11] sm:$0xff] %v302_v26 }
 0x11b   : > { %476 = shalt.err (!%p473_p3)
}
 0x11c   : > { %401 = dma.vmem_to_hbm [thread:$0]  (%p586_p5), %s319_s12, 128, %s321_s13, %s306_s14  }
 0x11d PF: > { %p407_p4 = scmp.ge.s32.totalorder %s511_s21, 2  ;;  %s332_s30 = sand.u32 1, %s499_s18  }
 0x11e   : > { %s333_s6 = scalar_lea.sflag [#allocation3], %s332_s30 }
 0x11f   : > { %p404_p7 = pnand %p407_p4, %p590_p6 }
 0x121   : > { %p405_p8 = pneg %p404_p7 }
 0x123   : > { %494 = dma.done.wait (%p405_p8), %s333_s6, 128  }
 0x124   : > { %496 = vsyncadd (%p405_p8), %s333_s6, 4294967168  ;;  %p15_p9 = scmp.ge.s32.totalorder %s573_s24, 4   ;;  %s653_s18 = smov %s503_s19 }
 0x125   : > { %s654_s19 = smov %s507_s20  ;;  %s655_s20 = smov %s584_s27 }
 0x126   : > { %s656_s21 = smov %s573_s24  ;;  %17 = sbr.rel (!%p15_p9) target bundleno = 3 (0x3), region = 78 }
 0x12b   :  { %339 = vsyncpa [#allocation3], 1 }
 0x12c   :  { %341 = vsyncpa [#allocation3 + $0x1], 1 }

</bundles_post_ra>
